<compile_context>
chip_gen: v7x
topology: tpu7x:2x2x1
jax: 0.10.0
libtpu: 0.0.40
codegen_flags: <defaults>
</compile_context>

<pallas_src>
import jax
import jax.numpy as jnp
from jax.experimental import pallas as pl
from jax.experimental.pallas import tpu as pltpu


_LANE = 128
_TINY_BYTES = 1 << 20  # below this, use the single-block fast path


def _softmax_c_kernel(x_ref, o_ref):
    # Softmax over axis=1 (the channel axis) of the current block.
    x = x_ref[...].astype(jnp.float32)
    m = jnp.max(x, axis=1, keepdims=True)
    e = jnp.exp(x - m)
    s = jnp.sum(e, axis=1, keepdims=True)
    o_ref[...] = (e * pl.reciprocal(s, approx=False)).astype(o_ref.dtype)


def _budgets():
    """(max_block_bytes, vmem_limit_bytes) tuned per TPU generation."""
    try:
        kind = jax.devices()[0].device_kind.lower()
    except Exception:
        kind = ""
    if "v5" in kind or "v6" in kind:
        # 128 MiB physical VMEM: large blocks amortize per-step overhead and
        # keep this HBM-bound kernel near the bandwidth roofline.
        return 8 << 20, 64 << 20
    # v7x (64 MiB physical VMEM) or unknown: stay conservative so
    # double-buffered in+out blocks plus f32 temporaries never spill.
    return 3 << 20, 48 << 20


def _pick_rows_tile(rows, c, itemsize, max_block_bytes):
    """Rows-per-block for the (N, C, rows, 128) layout."""
    max_rows = max(1, max_block_bytes // (c * _LANE * itemsize))
    if rows <= max_rows:
        return rows                      # full extent: always legal
    return max(8, (max_rows // 8) * 8)   # sublane granularity


def _pick_hw_tile(hw, c, itemsize, max_block_bytes):
    """Lane tile for the ragged (N, C, HW) layout (HW % 128 != 0)."""
    if c * hw * itemsize <= max_block_bytes:
        return hw                        # full extent: always legal
    max_lanes = max(_LANE, (max_block_bytes // (c * itemsize)) // _LANE * _LANE)
    if max_lanes >= hw:
        return hw
    return max_lanes


def softmax_dim1(x):
    """Equivalent of torch.nn.Softmax(dim=1)(x) for an NCHW input."""
    n, c, h, w = x.shape
    hw = h * w
    itemsize = jnp.dtype(x.dtype).itemsize
    total_bytes = n * c * hw * itemsize
    max_block_bytes, vmem_limit = _budgets()

    cost = pl.CostEstimate(
        flops=5 * n * c * hw,
        transcendentals=n * c * hw,
        bytes_accessed=2 * total_bytes,
    )

    x3 = x.reshape(n, c, hw)  # free metadata reshape, no HBM transpose

    # ---- Tiny-input fast path: one block, one grid step --------------------
    if total_bytes <= _TINY_BYTES:
        out3 = pl.pallas_call(
            _softmax_c_kernel,
            out_shape=jax.ShapeDtypeStruct((n, c, hw), x.dtype),
            grid_spec=pltpu.PrefetchScalarGridSpec(
                num_scalar_prefetch=0,
                grid=(1,),
                in_specs=[pl.BlockSpec((n, c, hw), lambda i: (0, 0, 0))],
                out_specs=pl.BlockSpec((n, c, hw), lambda i: (0, 0, 0)),
            ),
            compiler_params=pltpu.CompilerParams(
                dimension_semantics=("arbitrary",),
                vmem_limit_bytes=vmem_limit,
            ),
            cost_estimate=cost,
        )(x3)
        return out3.reshape(n, c, h, w)

    # ---- Lane-aligned main path: (N, C, HW//128, 128) -----------------------
    if hw % _LANE == 0:
        rows = hw // _LANE
        x4 = x3.reshape(n, c, rows, _LANE)
        rows_tile = _pick_rows_tile(rows, c, itemsize, max_block_bytes)
        tiles = pl.cdiv(rows, rows_tile)
        if n == 1 and tiles == 1 and rows >= 16:
            # Keep both v7x TensorCores busy (no-op cost on 1-TC chips).
            rows_tile = (((rows + 1) // 2 + 7) // 8) * 8
            tiles = pl.cdiv(rows, rows_tile)
        out4 = pl.pallas_call(
            _softmax_c_kernel,
            out_shape=jax.ShapeDtypeStruct((n, c, rows, _LANE), x.dtype),
            grid_spec=pltpu.PrefetchScalarGridSpec(
                num_scalar_prefetch=0,
                grid=(n, tiles),
                in_specs=[pl.BlockSpec((1, c, rows_tile, _LANE),
                                       lambda i, j: (i, 0, j, 0))],
                out_specs=pl.BlockSpec((1, c, rows_tile, _LANE),
                                       lambda i, j: (i, 0, j, 0)),
            ),
            compiler_params=pltpu.CompilerParams(
                dimension_semantics=("parallel", "parallel"),
                vmem_limit_bytes=vmem_limit,
            ),
            cost_estimate=cost,
        )(x4)
        return out4.reshape(n, c, h, w)

    # ---- Ragged HW path: (N, C, HW) with 128-multiple lane tiles ------------
    hw_tile = _pick_hw_tile(hw, c, itemsize, max_block_bytes)
    tiles = pl.cdiv(hw, hw_tile)
    if n == 1 and tiles == 1 and hw >= 2 * _LANE:
        hw_tile = ((hw // 2 + _LANE - 1) // _LANE) * _LANE
        tiles = pl.cdiv(hw, hw_tile)
    out3 = pl.pallas_call(
        _softmax_c_kernel,
        out_shape=jax.ShapeDtypeStruct((n, c, hw), x.dtype),
        grid_spec=pltpu.PrefetchScalarGridSpec(
            num_scalar_prefetch=0,
            grid=(n, tiles),
            in_specs=[pl.BlockSpec((1, c, hw_tile), lambda i, j: (i, 0, j))],
            out_specs=pl.BlockSpec((1, c, hw_tile), lambda i, j: (i, 0, j)),
        ),
        compiler_params=pltpu.CompilerParams(
            dimension_semantics=("parallel", "parallel"),
            vmem_limit_bytes=vmem_limit,
        ),
        cost_estimate=cost,
    )(x3)
    return out3.reshape(n, c, h, w)


if __name__ == "__main__":
    key = jax.random.PRNGKey(0)
    # TestNet has no parameters; NCHW input (batch=2, channels=4, 16x16).
    x = jax.random.normal(key, (2, 4, 16, 16), dtype=jnp.float32)

    out = softmax_dim1(x)
    out = jax.block_until_ready(out)

    # Sanity check against plain-JAX reference (same semantics as torch).
    ref = jax.nn.softmax(x, axis=1)
    assert out.shape == x.shape
    assert jnp.allclose(out, ref, atol=1e-6), "mismatch vs reference softmax"

    print("KERNEL_OK")
</pallas_src>

<mosaic_0001>
module attributes {stable_mosaic.version = 11 : i64} {
  func.func @_softmax_c_kernel(%arg0: i32, %arg1: memref<2x4x256xf32, #tpu.memory_space<vmem>>, %arg2: memref<2x4x256xf32, #tpu.memory_space<vmem>>) attributes {dimension_semantics = [#tpu.dimension_semantics<arbitrary>], iteration_bounds = array<i64: 1>, scalar_prefetch = 0 : i64, scratch_operands = 0 : i64, tpu.core_type = #tpu.core_type<tc>, window_params = [{pipeline_mode = #tpu.pipeline_mode<synchronous>, transform_indices = @transform_0, window_bounds = array<i64: 2, 4, 256>}, {pipeline_mode = #tpu.pipeline_mode<synchronous>, transform_indices = @transform_1, window_bounds = array<i64: 2, 4, 256>}]} {
    %c0 = arith.constant 0 : index
    %c0_0 = arith.constant 0 : index
    %c0_1 = arith.constant 0 : index
    %0 = vector.load %arg1[%c0, %c0_0, %c0_1] : memref<2x4x256xf32, #tpu.memory_space<vmem>>, vector<2x4x256xf32>
    %cst = arith.constant dense<0xFF800000> : vector<2x256xf32>
    %1 = vector.multi_reduction <maximumf>, %0, %cst [1] : vector<2x4x256xf32> to vector<2x256xf32>
    %2 = vector.shape_cast %1 : vector<2x256xf32> to vector<2x1x256xf32>
    %3 = vector.broadcast %2 : vector<2x1x256xf32> to vector<2x4x256xf32>
    %4 = arith.subf %0, %3 : vector<2x4x256xf32>
    %5 = math.exp %4 : vector<2x4x256xf32>
    %cst_2 = arith.constant dense<0.000000e+00> : vector<2x256xf32>
    %6 = vector.multi_reduction <add>, %5, %cst_2 [1] : vector<2x4x256xf32> to vector<2x256xf32>
    %7 = vector.shape_cast %6 : vector<2x256xf32> to vector<2x1x256xf32>
    %8 = tpu.reciprocal %7 : vector<2x1x256xf32> -> vector<2x1x256xf32>
    %9 = vector.broadcast %8 : vector<2x1x256xf32> to vector<2x4x256xf32>
    %10 = arith.mulf %5, %9 : vector<2x4x256xf32>
    %c0_3 = arith.constant 0 : index
    %c0_4 = arith.constant 0 : index
    %c0_5 = arith.constant 0 : index
    %11 = vector.load %arg2[%c0_3, %c0_4, %c0_5] : memref<2x4x256xf32, #tpu.memory_space<vmem>>, vector<2x4x256xf32>
    tpu.vector_store %arg2[%c0_3, %c0_4, %c0_5], %10 {strides = array<i32>} : memref<2x4x256xf32, #tpu.memory_space<vmem>>, vector<2x4x256xf32>,
    return
  }
  func.func @transform_0(%arg0: i32) -> (i32, i32, i32) {
    %c0_i32 = arith.constant 0 : i32
    %c0_i32_0 = arith.constant 0 : i32
    %c0_i32_1 = arith.constant 0 : i32
    %c0_i32_2 = arith.constant 0 : i32
    return %c0_i32, %c0_i32_0, %c0_i32_1 : i32, i32, i32
  }
  func.func @transform_1(%arg0: i32) -> (i32, i32, i32) {
    %c0_i32 = arith.constant 0 : i32
    %c0_i32_0 = arith.constant 0 : i32
    %c0_i32_1 = arith.constant 0 : i32
    %c0_i32_2 = arith.constant 0 : i32
    return %c0_i32, %c0_i32_0, %c0_i32_1 : i32, i32, i32
  }
}

</mosaic_0001>

<bundles_post_ra>
// kernel: tpu_custom_call.1
= control target key start
LH: loop header
LB: loop body
LE: loop exit
PB: predicated region body
PF: predicated region fallthrough
CT: control target
= control target key end

     0   :  { %6 = vsyncpa [#allocation3], 0  ;;  %s259_s0 = inlined_call_operand.hbm [shape: f32[2,4,256], index: 0, kind: input, shape index: {}]   ;;  %s260_s1 = inlined_call_operand.hbm [shape: f32[2,4,256], index: 1, kind: output, shape index: {}]  }
   0x1   :  { %7 = vsyncpa [#allocation4], 0  ;;  %s207_s6 = smov [#allocation2]   ;;  %s159_s10 = scalar_lea.hbm %s259_s0, 256 }
   0x2   :  { %s13_s7 = sshll.u32 %s207_s6, 4  ;;  %p160_p0 = scmp.ne.s32.totalorder %s259_s0, %s159_s10  ;;  %s14_s7 = int_to_ptr.vmem [resolvable:$true] %s13_s7 }
   0x3   :  { %p163_p1 = scmp.lt.u32.totalorder %s159_s10, %s259_s0 }
   0x5   :  { %p165_p2 = pnand %p163_p1, %p160_p0 }
   0x7   :  { %168 = shalt.err (!%p165_p2)
}
   0x8   :  { %s169_s15 = scalar_lea.vmem %s14_s7, 256  ;;  %p174_p4 = scmp.lt.s32.totalorder %s14_s7, %s14_s7 }
   0x9   :  { %p170_p3 = scmp.ne.s32.totalorder %s14_s7, %s169_s15  ;;  %p175_p5 = scmp.lt.s32.totalorder %s169_s15, %s169_s15 }
   0xb   :  { %p176_p6 = por %p175_p5, %p174_p4 }
   0xd   :  { %p177_p7 = pnand %p176_p6, %p170_p3 }
   0xf   :  { %180 = shalt.err (!%p177_p7)
}
  0x10   :  { %s208_s16 = smov 128   ;;  %s209_s17 = smov 8  }
  0x11   :  { %19 = dma.hbm_to_vmem [thread:$0]  %s259_s0, 256, %s14_s7, [#allocation3], %s208_s16, %s208_s16, %s209_s17  }
  0x12   :  { %203 = dma.done.wait [#allocation3], 256  }
  0x13   :  { %204 = vsyncadd [#allocation3], 4294967040  ;;  %vm31_vm0 = vcmask 1043456   ;;  %v23_v0 = vld [vmem:[#allocation2] sm:$0xff]  ;;  %v24_v1 = vld [vmem:[#allocation2 + $0x8] sm:$0xff]  ;;  %s210_s0 = smov [#allocation5]  }
  0x14   :  { %v27_v2 = vcombine.high %v23_v0, %v23_v0  ;;  %v32_v3 = vsel %vm31_vm0, %v23_v0, -inf  ;;  %v28_v4 = vcombine.high %v24_v1, %v24_v1  ;;  %v46_v5 = vsel %vm31_vm0, %v24_v1, -inf  ;;  %s129_s20 = sshll.u32 %s210_s0, 4  ;;  %s130_s20 = int_to_ptr.vmem [resolvable:$true] %s129_s20 }
  0x15   :  { %v33_v6 = vrot.slane %v32_v3, 4  ;;  %v47_v7 = vrot.slane %v46_v5, 4  ;;  %s181_s21 = scalar_lea.vmem %s130_s20, 256  ;;  %p186_p9 = scmp.lt.s32.totalorder %s130_s20, %s130_s20 }
  0x16   :  { %v39_v8 = vsel %vm31_vm0, %v27_v2, -inf  ;;  %v53_v9 = vsel %vm31_vm0, %v28_v4, -inf  ;;  %p182_p8 = scmp.ne.s32.totalorder %s130_s20, %s181_s21  ;;  %p187_p10 = scmp.lt.s32.totalorder %s181_s21, %s181_s21 }
  0x17   :  { %v34_v10 = vmax.f32 %v32_v3, %v33_v6  ;;  %v40_v11 = vrot.slane %v39_v8, 4  ;;  %v48_v12 = vmax.f32 %v46_v5, %v47_v7  ;;  %v54_v13 = vrot.slane %v53_v9, 4 }
  0x18   :  { %p188_p11 = por %p187_p10, %p186_p9 }
  0x19   :  { %v35_v14 = vrot.slane %v34_v10, 2  ;;  %v41_v15 = vmax.f32 %v39_v8, %v40_v11  ;;  %v49_v16 = vrot.slane %v48_v12, 2  ;;  %v55_v17 = vmax.f32 %v53_v9, %v54_v13 }
  0x1a   :  { %p189_p12 = pnand %p188_p11, %p182_p8 }
  0x1b   :  { %v36_v18 = vmax.f32 %v34_v10, %v35_v14  ;;  %v42_v19 = vrot.slane %v41_v15, 2  ;;  %v50_v20 = vmax.f32 %v48_v12, %v49_v16  ;;  %v56_v21 = vrot.slane %v55_v17, 2 }
  0x1d   :  { %v37_v22 = vrot.slane %v36_v18, 1  ;;  %v43_v23 = vmax.f32 %v41_v15, %v42_v19  ;;  %v51_v24 = vrot.slane %v50_v20, 1  ;;  %v57_v25 = vmax.f32 %v55_v17, %v56_v21 }
  0x1f   :  { %v38_v26 = vmax.f32 %v36_v18, %v37_v22  ;;  %v44_v27 = vrot.slane %v43_v23, 1  ;;  %v52_v28 = vmax.f32 %v50_v20, %v51_v24  ;;  %v58_v29 = vrot.slane %v57_v25, 1 }
  0x21   :  { %v45_v30 = vmax.f32 %v43_v23, %v44_v27  ;;  %v59_v31 = vmax.f32 %v57_v25, %v58_v29 }
  0x23   :  { %v64_v32 = vcombine.low %v38_v26, %v45_v30  ;;  %v65_v33 = vcombine.low %v52_v28, %v59_v31 }
  0x25   :  { %v68_v34 = vsub.f32 %v23_v0, %v64_v32  ;;  %v69_v35 = vsub.f32 %v24_v1, %v65_v33 }
  0x27   :  { %v70_v36 = vmul.f32 1.442695, %v68_v34  ;;  %v72_v37 = vmul.f32 1.442695, %v69_v35 }
  0x29   :  { %147 = vpow2.f32 %v70_v36 }
  0x2a   :  { %149 = vpow2.f32 %v72_v37 }
  0x33   :  { %v148_v38 = vpop.eup %147 }
  0x34   :  { %v150_v39 = vpop.eup %149  ;;  %v76_v40 = vcombine.high %v148_v38, %v148_v38  ;;  %v80_v41 = vsel %vm31_vm0, %v148_v38, 0.0 }
  0x35   :  { %v81_v42 = vrot.slane %v80_v41, 4  ;;  %v77_v43 = vcombine.high %v150_v39, %v150_v39  ;;  %v94_v44 = vsel %vm31_vm0, %v150_v39, 0.0 }
  0x36   :  { %v87_v45 = vsel %vm31_vm0, %v76_v40, 0.0  ;;  %v95_v46 = vrot.slane %v94_v44, 4 }
  0x37   :  { %v82_v47 = vadd.f32 %v81_v42, %v80_v41  ;;  %v88_v48 = vrot.slane %v87_v45, 4  ;;  %v101_v49 = vsel %vm31_vm0, %v77_v43, 0.0 }
  0x38   :  { %v96_v50 = vadd.f32 %v95_v46, %v94_v44  ;;  %v102_v51 = vrot.slane %v101_v49, 4 }
  0x39   :  { %v83_v52 = vrot.slane %v82_v47, 2  ;;  %v89_v53 = vadd.f32 %v88_v48, %v87_v45 }
  0x3a   :  { %v97_v54 = vrot.slane %v96_v50, 2  ;;  %v103_v55 = vadd.f32 %v102_v51, %v101_v49 }
  0x3b   :  { %v84_v56 = vadd.f32 %v83_v52, %v82_v47  ;;  %v90_v57 = vrot.slane %v89_v53, 2 }
  0x3c   :  { %v98_v58 = vadd.f32 %v97_v54, %v96_v50  ;;  %v104_v59 = vrot.slane %v103_v55, 2 }
  0x3d   :  { %v85_v60 = vrot.slane %v84_v56, 1  ;;  %v91_v61 = vadd.f32 %v90_v57, %v89_v53 }
  0x3e   :  { %v99_v62 = vrot.slane %v98_v58, 1  ;;  %v105_v63 = vadd.f32 %v104_v59, %v103_v55 }
  0x3f   :  { %v86_v0 = vadd.f32 %v85_v60, %v84_v56  ;;  %v92_v1 = vrot.slane %v91_v61, 1 }
  0x40   :  { %v100_v2 = vadd.f32 %v99_v62, %v98_v58  ;;  %v106_v3 = vrot.slane %v105_v63, 1 }
  0x41   :  { %v93_v4 = vadd.f32 %v92_v1, %v91_v61  ;;  %151 = vrcp.f32 %v86_v0 }
  0x42   :  { %v107_v5 = vadd.f32 %v106_v3, %v105_v63  ;;  %153 = vrcp.f32 %v100_v2 }
  0x43   :  { %155 = vrcp.f32 %v93_v4 }
  0x44   :  { %157 = vrcp.f32 %v107_v5 }
  0x4b   :  { %v152_v6 = vpop.eup %151 }
  0x4c   :  { %v154_v7 = vpop.eup %153 }
  0x4d   :  { %v156_v8 = vpop.eup %155 }
  0x4e   :  { %v158_v9 = vpop.eup %157  ;;  %v116_v10 = vcombine.low %v152_v6, %v156_v8 }
  0x4f   :  { %v117_v11 = vcombine.low %v154_v7, %v158_v9 }
  0x50   :  { %v120_v12 = vmul.f32 %v148_v38, %v116_v10 }
  0x51   :  { %v121_v13 = vmul.f32 %v150_v39, %v117_v11 }
  0x52   :  { %122 = vst [vmem:[#allocation5] sm:$0xff] %v120_v12 }
  0x53   :  { %123 = vst [vmem:[#allocation5 + $0x8] sm:$0xff] %v121_v13 }
  0x54   :  { %192 = shalt.err (!%p189_p12)
}
  0x55   :  { %s193_s24 = scalar_lea.hbm %s260_s1, 256 }
  0x56   :  { %p194_p13 = scmp.ne.s32.totalorder %s260_s1, %s193_s24  ;;  %p197_p0 = scmp.lt.u32.totalorder %s193_s24, %s260_s1 }
  0x58   :  { %p199_p1 = pnand %p197_p0, %p194_p13 }
  0x5a   :  { %202 = shalt.err (!%p199_p1)
}
  0x5b   :  { %135 = dma.vmem_to_hbm [thread:$0]  %s130_s20, 256, %s260_s1, [#allocation4], %s208_s16, %s208_s16, %s209_s17  }
  0x5c   :  { %205 = dma.done.wait [#allocation4], 256  }
  0x5d   :  { %206 = vsyncadd [#allocation4], 4294967040 }
  0x5e   :  { %139 = vsyncpa [#allocation3], 1 }
  0x5f   :  { %140 = vsyncpa [#allocation4], 1 }

</bundles_post_ra>
